<compile_context>
chip_gen: v5e
topology: v5e:2x2
jax: 0.10.0
libtpu: 0.0.40
codegen_flags: <defaults>
</compile_context>

<pallas_src>
import numpy as np
import jax
import jax.numpy as jnp
from jax.experimental import pallas as pl
from jax.experimental.pallas import tpu as pltpu


def _round_up(x, m):
    return ((x + m - 1) // m) * m


def _build_kernel(paths, u, num_seg_out, bcast, out_dtype):
    """paths: list of (i0, i1, i2, io, coeff); bcast: per-input broadcast flags.

    Returns (kernel, n_used_segments, n_cached_products) — the latter two feed
    the wrapper's VMEM footprint model.
    """
    by_out = [[] for _ in range(num_seg_out)]
    for (i0, i1, i2, io, coeff) in paths:
        by_out[int(io)].append((int(i0), int(i1), int(i2), float(coeff)))

    # ---- static reuse analysis (pure trace-time Python) ------------------
    triple_count = {}
    for plist in by_out:
        for (i0, i1, i2, _c) in plist:
            triple_count[(i0, i1, i2)] = triple_count.get((i0, i1, i2), 0) + 1
    # A pair is consumed once per *distinct* triple sharing that prefix
    # (multi-use triples are computed exactly once).
    pair_count = {}
    for (i0, i1, _i2) in triple_count:
        pair_count[(i0, i1)] = pair_count.get((i0, i1), 0) + 1

    used_segs = set()
    for plist in by_out:
        for (i0, i1, i2, _c) in plist:
            used_segs.update({(0, i0), (1, i1), (2, i2)})
    n_cached = (sum(1 for c in pair_count.values() if c > 1)
                + sum(1 for c in triple_count.values() if c > 1))

    all_bcast = all(bcast)
    lane_dense = (u % 128 == 0)  # per-segment stores are unmasked 128-lane vst

    def kernel(x0_ref, x1_ref, x2_ref, out_ref):
        refs = (x0_ref, x1_ref, x2_ref)
        out_rows = out_ref.shape[0]
        acc_rows = 1 if all_bcast else out_rows

        # Lazy per-segment f32 promotion; never-referenced segments are never
        # loaded or cast.
        seg_cache = {}

        def seg(op, idx):
            key = (op, idx)
            if key not in seg_cache:
                v = refs[op][:, idx * u:(idx + 1) * u]
                if v.dtype != jnp.float32:
                    v = v.astype(jnp.float32)
                seg_cache[key] = v
            return seg_cache[key]

        pair_cache = {}

        def pair(i0, i1):
            key = (i0, i1)
            if key in pair_cache:
                return pair_cache[key]
            v = seg(0, i0) * seg(1, i1)
            if pair_count.get(key, 0) > 1:      # cache only multi-use products
                pair_cache[key] = v
            return v

        trip_cache = {}

        def triple(i0, i1, i2):
            key = (i0, i1, i2)
            if key in trip_cache:
                return trip_cache[key]
            v = pair(i0, i1) * seg(2, i2)
            if triple_count.get(key, 0) > 1:
                trip_cache[key] = v
            return v

        segs_out = []  # only used on the (rare) non-lane-dense fallback path
        for io in range(num_seg_out):
            acc = None
            for (i0, i1, i2, coeff) in by_out[io]:
                p = triple(i0, i1, i2)
                if coeff == 1.0:                 # fold +-1 coeff into add/sub
                    acc = p if acc is None else acc + p
                elif coeff == -1.0:
                    acc = -p if acc is None else acc - p
                else:
                    t = coeff * p
                    acc = t if acc is None else acc + t

            if lane_dense:
                sl = slice(io * u, (io + 1) * u)
                if acc is None:                  # no paths -> write zeros
                    out_ref[:, sl] = jnp.zeros((out_rows, u), out_dtype)
                else:
                    if all_bcast:
                        acc = jnp.broadcast_to(acc, (out_rows, u))
                    out_ref[:, sl] = acc.astype(out_dtype)
            else:
                segs_out.append(acc if acc is not None
                                else jnp.zeros((acc_rows, u), jnp.float32))

        if not lane_dense:
            full = jnp.concatenate(segs_out, axis=-1)
            if all_bcast:
                full = jnp.broadcast_to(full, out_ref.shape)
            out_ref[...] = full.astype(out_dtype)

    return kernel, len(used_segs), n_cached


def fused_tensor_product_op4(x0, x1, x2, *, paths, u, num_segments, perm=(0, 1, 2)):
    """Forward of FusedTensorProductOp4 (output is the last operand).

    paths:        list of (i0, i1, i2, i_out, coeff) segment-index tuples.
    num_segments: (n0, n1, n2, n_out) segment counts of the descriptor operands.
    perm:         descriptor operand k reads user input perm[k] (module's _perm).
    """
    xs = (x0, x1, x2)
    x0, x1, x2 = (xs[perm[0]], xs[perm[1]], xs[perm[2]])

    n0, n1, n2, n_out = num_segments
    assert x0.ndim == 2 and x1.ndim == 2 and x2.ndim == 2, "(batch, dim) or (1, dim)"
    dims = (n0 * u, n1 * u, n2 * u)
    assert x0.shape[1] == dims[0] and x1.shape[1] == dims[1] and x2.shape[1] == dims[2]
    for (_, _, _, io, _) in paths:
        assert 0 <= io < n_out
    dim_out = n_out * u

    batch = max(x0.shape[0], x1.shape[0], x2.shape[0])
    for x in (x0, x1, x2):
        assert x.shape[0] in (1, batch), "inputs must be (batch, dim) or (1, dim)"

    out_dtype = jnp.result_type(x0.dtype, x1.dtype, x2.dtype)
    if batch == 0:
        return jnp.zeros((0, dim_out), out_dtype)

    bcast = tuple(x.shape[0] == 1 for x in (x0, x1, x2))
    kernel, n_used_segs, n_cached = _build_kernel(paths, u, n_out, bcast, out_dtype)

    # ---- tile-size selection: VMEM-budget driven (mem-bound roofline) ----
    in_isz = [jnp.dtype(x.dtype).itemsize for x in (x0, x1, x2)]
    out_isz = jnp.dtype(out_dtype).itemsize

    def _sub_base(isz):                      # sublane minimum per dtype width
        return {1: 32, 2: 16}.get(isz, 8)

    base = _sub_base(out_isz)
    for bc, isz in zip(bcast, in_isz):
        if not bc:
            base = max(base, _sub_base(isz))

    # Per-step VMEM footprint model: double-buffered I/O tiles + f32 temps
    # (segment casts, cached products, accumulator, slack).
    def footprint(tb_rows):
        io_b = sum((1 if bc else tb_rows) * d * isz * 2
                   for bc, d, isz in zip(bcast, dims, in_isz))
        io_b += tb_rows * dim_out * out_isz * 2
        tmp_b = (n_used_segs + n_cached + 4) * tb_rows * u * 4
        return io_b + tmp_b

    try:
        info = pltpu.get_tpu_info()
        vmem_cap = int(getattr(info, "vmem_capacity_bytes", 64 * 2**20))
    except Exception:
        vmem_cap = 64 * 2**20                # conservative: v7x per-TC VMEM
    budget = int(0.70 * vmem_cap)            # leave headroom for XLA fusions

    fixed = footprint(0)
    per_row = max(footprint(1) - fixed, 1)
    tb_max = (budget - fixed) // per_row
    tb_max = max(base, min(1024, (tb_max // base) * base))

    # Pad batch only to the sublane base; pick the step count first (>=2 when
    # possible so the "parallel" axis splits across v7x's 2 TensorCores), then
    # tb is the smallest base-multiple covering the batch in that many steps.
    padded_base = _round_up(batch, base)
    nsteps = max(-(-padded_base // tb_max), 2 if padded_base >= 2 * base else 1)
    tb = _round_up(-(-padded_base // nsteps), base)
    padded = nsteps * tb
    grid = (nsteps,)

    vmem_limit = int(max(16 * 2**20, min(budget, int(1.25 * footprint(tb)))))

    def _pad(x, bc):
        if bc or x.shape[0] == padded:
            return x
        return jnp.pad(x, ((0, padded - x.shape[0]), (0, 0)))

    x0p, x1p, x2p = (_pad(x, b) for x, b in zip((x0, x1, x2), bcast))

    def _in_spec(bc, dim):
        if bc:
            return pl.BlockSpec((1, dim), lambda i: (0, 0))
        return pl.BlockSpec((tb, dim), lambda i: (i, 0))

    out = pl.pallas_call(
        kernel,
        out_shape=jax.ShapeDtypeStruct((padded, dim_out), out_dtype),
        grid_spec=pltpu.PrefetchScalarGridSpec(
            num_scalar_prefetch=0,
            grid=grid,
            in_specs=[
                _in_spec(bcast[0], dims[0]),
                _in_spec(bcast[1], dims[1]),
                _in_spec(bcast[2], dims[2]),
            ],
            out_specs=pl.BlockSpec((tb, dim_out), lambda i: (i, 0)),
        ),
        compiler_params=pltpu.CompilerParams(
            dimension_semantics=("parallel",),   # independent blocks -> megacore
            vmem_limit_bytes=vmem_limit,
        ),
    )(x0p, x1p, x2p)

    return out[:batch] if padded != batch else out


def _reference(x0, x1, x2, paths, u, n_out, perm):
    xs = (x0, x1, x2)
    x0, x1, x2 = (np.asarray(xs[perm[0]], np.float32),
                  np.asarray(xs[perm[1]], np.float32),
                  np.asarray(xs[perm[2]], np.float32))
    batch = max(x0.shape[0], x1.shape[0], x2.shape[0])
    out = np.zeros((batch, n_out * u), np.float32)
    for b in range(batch):
        a = x0[b if x0.shape[0] > 1 else 0]
        bb = x1[b if x1.shape[0] > 1 else 0]
        c = x2[b if x2.shape[0] > 1 else 0]
        for (i0, i1, i2, io, coeff) in paths:
            out[b, io * u:(io + 1) * u] += (
                coeff
                * a[i0 * u:(i0 + 1) * u]
                * bb[i1 * u:(i1 + 1) * u]
                * c[i2 * u:(i2 + 1) * u]
            )
    return out


if __name__ == "__main__":
    # Deterministic synthetic descriptor: 4 operands, uniform 1-d mode u=128,
    # segment counts (3, 4, 2, 5), scalar path coefficients, math_dtype=float32.
    # perm=(1,0,2): descriptor operand 0 reads user x1, operand 1 reads user x0.
    u = 128
    num_segments = (3, 4, 2, 5)          # (n0, n1, n2, n_out) of the descriptor
    perm = (1, 0, 2)
    paths = [
        # (i0, i1, i2, i_out, coeff)
        (0, 0, 0, 0, 1.0),
        (0, 1, 1, 1, 0.5),
        (1, 2, 0, 2, -0.75),
        (2, 3, 1, 3, 0.25),
        (1, 0, 1, 4, 2.0),
        (2, 1, 0, 0, -1.0),              # second path into segment 0 (accumulate, sign fold)
        (0, 0, 0, 4, 1.25),              # duplicate (i0,i1,i2) -> product-cache reuse
    ]

    batch = 24                           # not a multiple of the tile -> ragged pad
    key = jax.random.PRNGKey(0)
    k0, k1, k2 = jax.random.split(key, 3)
    # User input j feeds descriptor operand perm.index(j):
    x0_user = jax.random.normal(k0, (batch, num_segments[1] * u), jnp.float32)  # -> operand 1
    x1_user = jax.random.normal(k1, (batch, num_segments[0] * u), jnp.float32)  # -> operand 0
    x2_user = jax.random.normal(k2, (1, num_segments[2] * u), jnp.float32)      # broadcast input

    out = fused_tensor_product_op4(
        x0_user, x1_user, x2_user,
        paths=paths, u=u, num_segments=num_segments, perm=perm,
    )
    out = jax.block_until_ready(out)

    ref = _reference(x0_user, x1_user, x2_user, paths, u, num_segments[3], perm)
    np.testing.assert_allclose(np.asarray(out), ref, rtol=1e-5, atol=1e-5)
    print("KERNEL_OK")
</pallas_src>

<mosaic_0001>
module attributes {stable_mosaic.version = 11 : i64} {
  func.func @kernel(%arg0: i32, %arg1: memref<16x384xf32, #tpu.memory_space<vmem>>, %arg2: memref<16x512xf32, #tpu.memory_space<vmem>>, %arg3: memref<1x256xf32, #tpu.memory_space<vmem>>, %arg4: memref<16x640xf32, #tpu.memory_space<vmem>>) attributes {dimension_semantics = [#tpu.dimension_semantics<parallel>], iteration_bounds = array<i64: 2>, scalar_prefetch = 0 : i64, scratch_operands = 0 : i64, tpu.core_type = #tpu.core_type<tc>, window_params = [{transform_indices = @transform_0, window_bounds = array<i64: 16, 384>}, {transform_indices = @transform_1, window_bounds = array<i64: 16, 512>}, {pipeline_mode = #tpu.pipeline_mode<synchronous>, transform_indices = @transform_2, window_bounds = array<i64: 1, 256>}, {transform_indices = @transform_3, window_bounds = array<i64: 16, 640>}]} {
    %c0 = arith.constant 0 : index
    %c0_0 = arith.constant 0 : index
    %0 = vector.load %arg1[%c0, %c0_0] : memref<16x384xf32, #tpu.memory_space<vmem>>, vector<16x128xf32>
    %c0_1 = arith.constant 0 : index
    %c0_2 = arith.constant 0 : index
    %1 = vector.load %arg2[%c0_1, %c0_2] : memref<16x512xf32, #tpu.memory_space<vmem>>, vector<16x128xf32>
    %2 = arith.mulf %0, %1 : vector<16x128xf32>
    %c0_3 = arith.constant 0 : index
    %c0_4 = arith.constant 0 : index
    %3 = vector.load %arg3[%c0_3, %c0_4] : memref<1x256xf32, #tpu.memory_space<vmem>>, vector<1x128xf32>
    %4 = vector.broadcast %3 : vector<1x128xf32> to vector<16x128xf32>
    %5 = arith.mulf %2, %4 : vector<16x128xf32>
    %c0_5 = arith.constant 0 : index
    %c256 = arith.constant 256 : index
    %6 = vector.load %arg1[%c0_5, %c256] : memref<16x384xf32, #tpu.memory_space<vmem>>, vector<16x128xf32>
    %c0_6 = arith.constant 0 : index
    %c128 = arith.constant 128 : index
    %7 = vector.load %arg2[%c0_6, %c128] : memref<16x512xf32, #tpu.memory_space<vmem>>, vector<16x128xf32>
    %8 = arith.mulf %6, %7 : vector<16x128xf32>
    %9 = vector.broadcast %3 : vector<1x128xf32> to vector<16x128xf32>
    %10 = arith.mulf %8, %9 : vector<16x128xf32>
    %11 = arith.subf %5, %10 : vector<16x128xf32>
    %c0_7 = arith.constant 0 : index
    %c0_8 = arith.constant 0 : index
    %12 = vector.load %arg4[%c0_7, %c0_8] : memref<16x640xf32, #tpu.memory_space<vmem>>, vector<16x128xf32>
    tpu.vector_store %arg4[%c0_7, %c0_8], %11 {strides = array<i32>} : memref<16x640xf32, #tpu.memory_space<vmem>>, vector<16x128xf32>,
    %13 = arith.mulf %0, %7 : vector<16x128xf32>
    %c0_9 = arith.constant 0 : index
    %c128_10 = arith.constant 128 : index
    %14 = vector.load %arg3[%c0_9, %c128_10] : memref<1x256xf32, #tpu.memory_space<vmem>>, vector<1x128xf32>
    %15 = vector.broadcast %14 : vector<1x128xf32> to vector<16x128xf32>
    %16 = arith.mulf %13, %15 : vector<16x128xf32>
    %cst = arith.constant 5.000000e-01 : f32
    %17 = vector.broadcast %cst : f32 to vector<16x128xf32>
    %18 = arith.mulf %17, %16 : vector<16x128xf32>
    %c0_11 = arith.constant 0 : index
    %c128_12 = arith.constant 128 : index
    %19 = vector.load %arg4[%c0_11, %c128_12] : memref<16x640xf32, #tpu.memory_space<vmem>>, vector<16x128xf32>
    tpu.vector_store %arg4[%c0_11, %c128_12], %18 {strides = array<i32>} : memref<16x640xf32, #tpu.memory_space<vmem>>, vector<16x128xf32>,
    %c0_13 = arith.constant 0 : index
    %c128_14 = arith.constant 128 : index
    %20 = vector.load %arg1[%c0_13, %c128_14] : memref<16x384xf32, #tpu.memory_space<vmem>>, vector<16x128xf32>
    %c0_15 = arith.constant 0 : index
    %c256_16 = arith.constant 256 : index
    %21 = vector.load %arg2[%c0_15, %c256_16] : memref<16x512xf32, #tpu.memory_space<vmem>>, vector<16x128xf32>
    %22 = arith.mulf %20, %21 : vector<16x128xf32>
    %23 = vector.broadcast %3 : vector<1x128xf32> to vector<16x128xf32>
    %24 = arith.mulf %22, %23 : vector<16x128xf32>
    %cst_17 = arith.constant -7.500000e-01 : f32
    %25 = vector.broadcast %cst_17 : f32 to vector<16x128xf32>
    %26 = arith.mulf %25, %24 : vector<16x128xf32>
    %c0_18 = arith.constant 0 : index
    %c256_19 = arith.constant 256 : index
    %27 = vector.load %arg4[%c0_18, %c256_19] : memref<16x640xf32, #tpu.memory_space<vmem>>, vector<16x128xf32>
    tpu.vector_store %arg4[%c0_18, %c256_19], %26 {strides = array<i32>} : memref<16x640xf32, #tpu.memory_space<vmem>>, vector<16x128xf32>,
    %c0_20 = arith.constant 0 : index
    %c384 = arith.constant 384 : index
    %28 = vector.load %arg2[%c0_20, %c384] : memref<16x512xf32, #tpu.memory_space<vmem>>, vector<16x128xf32>
    %29 = arith.mulf %6, %28 : vector<16x128xf32>
    %30 = vector.broadcast %14 : vector<1x128xf32> to vector<16x128xf32>
    %31 = arith.mulf %29, %30 : vector<16x128xf32>
    %cst_21 = arith.constant 2.500000e-01 : f32
    %32 = vector.broadcast %cst_21 : f32 to vector<16x128xf32>
    %33 = arith.mulf %32, %31 : vector<16x128xf32>
    %c0_22 = arith.constant 0 : index
    %c384_23 = arith.constant 384 : index
    %34 = vector.load %arg4[%c0_22, %c384_23] : memref<16x640xf32, #tpu.memory_space<vmem>>, vector<16x128xf32>
    tpu.vector_store %arg4[%c0_22, %c384_23], %33 {strides = array<i32>} : memref<16x640xf32, #tpu.memory_space<vmem>>, vector<16x128xf32>,
    %35 = arith.mulf %20, %1 : vector<16x128xf32>
    %36 = vector.broadcast %14 : vector<1x128xf32> to vector<16x128xf32>
    %37 = arith.mulf %35, %36 : vector<16x128xf32>
    %cst_24 = arith.constant 2.000000e+00 : f32
    %38 = vector.broadcast %cst_24 : f32 to vector<16x128xf32>
    %39 = arith.mulf %38, %37 : vector<16x128xf32>
    %cst_25 = arith.constant 1.250000e+00 : f32
    %40 = vector.broadcast %cst_25 : f32 to vector<16x128xf32>
    %41 = arith.mulf %40, %5 : vector<16x128xf32>
    %42 = arith.addf %39, %41 : vector<16x128xf32>
    %c0_26 = arith.constant 0 : index
    %c512 = arith.constant 512 : index
    %43 = vector.load %arg4[%c0_26, %c512] : memref<16x640xf32, #tpu.memory_space<vmem>>, vector<16x128xf32>
    tpu.vector_store %arg4[%c0_26, %c512], %42 {strides = array<i32>} : memref<16x640xf32, #tpu.memory_space<vmem>>, vector<16x128xf32>,
    return
  }
  func.func @transform_0(%arg0: i32) -> (i32, i32) {
    %c0_i32 = arith.constant 0 : i32
    %c0_i32_0 = arith.constant 0 : i32
    return %arg0, %c0_i32 : i32, i32
  }
  func.func @transform_1(%arg0: i32) -> (i32, i32) {
    %c0_i32 = arith.constant 0 : i32
    %c0_i32_0 = arith.constant 0 : i32
    return %arg0, %c0_i32 : i32, i32
  }
  func.func @transform_2(%arg0: i32) -> (i32, i32) {
    %c0_i32 = arith.constant 0 : i32
    %c0_i32_0 = arith.constant 0 : i32
    %c0_i32_1 = arith.constant 0 : i32
    return %c0_i32, %c0_i32_0 : i32, i32
  }
  func.func @transform_3(%arg0: i32) -> (i32, i32) {
    %c0_i32 = arith.constant 0 : i32
    %c0_i32_0 = arith.constant 0 : i32
    return %arg0, %c0_i32 : i32, i32
  }
}

</mosaic_0001>

<bundles_post_ra>
// kernel: tpu_custom_call.1
= control target key start
LH: loop header
LB: loop body
LE: loop exit
PB: predicated region body
PF: predicated region fallthrough
CT: control target
= control target key end

     0   :  { %s939_s0 = inlined_call_operand.hbm [shape: f32[32,384], index: 0, kind: input, shape index: {}]   ;;  %s940_s1 = inlined_call_operand.hbm [shape: f32[32,512], index: 1, kind: input, shape index: {}]   ;;  %s941_s2 = inlined_call_operand.hbm [shape: f32[1,256], index: 2, kind: input, shape index: {}]   ;;  %s942_s3 = inlined_call_operand.hbm [shape: f32[32,640], index: 3, kind: output, shape index: {}]  }
   0x1   :  { %943 = sst [smem:[#allocation14_spill]] %s939_s0 }
   0x2   :  { %944 = sst [smem:[#allocation15_spill]] %s941_s2 }
   0x3   :  { %8 = vsyncpa [#allocation3], 0 }
   0x4   :  { %10 = vsyncpa [#allocation3 + $0x1], 0 }
   0x5   :  { %11 = vsyncpa [#allocation6], 0 }
   0x6   :  { %13 = vsyncpa [#allocation6 + $0x1], 0 }
   0x7   :  { %14 = vsyncpa [#allocation4], 0 }
   0x8   :  { %16 = vsyncpa [#allocation4 + $0x1], 0  ;;  %s733_s12 = smov 0   ;;  %s735_s13 = smov 0  }
   0x9   :  { %s737_s14 = smov 0   ;;  %s739_s15 = smov 0  }
   0xa LB: > { %s754_s16 = sadd.s32 4294967295, %s704_s15   ;;  %s444_s17 = sadd.s32 4294967294, %s704_s15   ;;  %s704_s15 = sphi %s739_s15, %s959_s15   ;;  %s700_s14 = sphi %s737_s14, %s958_s14   ;;  %s696_s13 = sphi %s735_s13, %s957_s13   ;;  %s692_s12 = sphi %s733_s12, %s956_s12  }
   0xb   : > { %s758_s18 = sadd.s32 1, %s704_s15   ;;  %s29_s19 = sadd.s32 1, %s700_s14 }
   0xc   : > { %s26_s20 = ssub.s32 %s704_s15, %s758_s18  ;;  %p36_p0 = scmp.ne.s32.totalorder %s700_s14, %s696_s13 }
   0xd   : > { %p27_p1 = scmp.eq.s32.totalorder %s26_s20, 0  ;;  %p37_p2 = scmp.eq.s32.totalorder %s704_s15, 0 }
   0xe   : > { %p42_p3 = scmp.ne.s32.totalorder %s696_s13, %s692_s12  ;;  %p43_p4 = scmp.eq.s32.totalorder %s754_s16, 0 }
   0xf   : > { %s770_s21 = scalar_select %p27_p1, %s700_s14, %s29_s19  }
  0x10   : > { %p772_p5 = por %p37_p2, %p36_p0  ;;  %p778_p6 = por %p43_p4, %p42_p3 }
  0x11   : > { %945 = sst [smem:[#allocation13_spill]] %s770_s21  ;;  %p113_p7 = scmp.eq.s32.totalorder %s754_s16, 1 }
  0x12   : > { %p119_p8 = scmp.eq.s32.totalorder %s444_s17, 1  ;;  %p445_p9 = scmp.ge.s32.totalorder %s704_s15, 1 }
  0x13   : > { %p126_p10 = scmp.lt.s32.totalorder %s704_s15, 3  ;;  %p785_p11 = por %p113_p7, %p36_p0 }
  0x14   : > { %p789_p12 = por %p119_p8, %p42_p3  ;;  %s951_s2 = sld [smem:[#allocation15_spill]] }
  0x15   : > { %p793_p13 = pnand %p445_p9, %p126_p10  ;;  %s706_s30 = smov [#allocation7]  }
  0x16   : > { %s140_s4 = sshll.u32 %s706_s30, 4  ;;  %p496_p3 = scmp.lt.s32.totalorder %s704_s15, 2  ;;  %s141_s4 = int_to_ptr.vmem [resolvable:$true] %s140_s4 }
  0x17   : > { %p480_p1 = pneg %p793_p13  ;;  %s807_s5 = sand.u32 1, %s700_s14  }
  0x18   : > { %p811_p7 = pnand %p496_p3, %p772_p5  ;;  %s465_s7 = smul.u32 48, %s807_s5 }
  0x19   : > { %p481_p2 = pnand %p480_p1, %p43_p4  ;;  %s466_s8 = smul.u32 48, %s704_s15 }
  0x1a   : > { %s138_s29 = sshll.u32 %s951_s2, 4  ;;  %s953_s0 = sld [smem:[#allocation14_spill]]  ;;  %s139_s29 = int_to_ptr.hbm [resolvable:$true] %s138_s29 }
  0x1b   : > { %483 = dma.hbm_to_vmem [thread:$0]  (!%p481_p2), %s139_s29, 32, %s141_s4, [#allocation6]  }
  0x1c   : > { %s155_s17 = scalar_lea.vmem [#allocation2], %s465_s7  ;;  %s152_s27 = scalar_lea.sflag [#allocation3], %s807_s5 }
  0x1d   : > { %s164_s19 = sshll.u32 %s155_s17, 4  ;;  %p574_p8 = pneg %p811_p7  ;;  %s165_s19 = int_to_ptr.vmem [resolvable:$true] %s164_s19 }
  0x20   : > { %s161_s11 = scalar_lea.hbm %s953_s0, %s466_s8  ;;  %s577_s4 = scalar_lea.hbm %s953_s0, 96 }
  0x21   : > { %s162_s20 = sshll.u32 %s161_s11, 4  ;;  %s163_s20 = int_to_ptr.hbm [resolvable:$true] %s162_s20 }
  0x22   : > { %s570_s28 = sshra.s32 %s163_s20, 4  ;;  %s571_s28 = int_to_ptr.hbm [resolvable:$true] %s570_s28 }
  0x23   : > { %s572_s22 = scalar_lea.hbm %s571_s28, 48  ;;  %p578_p1 = scmp.lt.s32.totalorder %s571_s28, %s953_s0 }
  0x24   : > { %p573_p5 = scmp.ne.s32.totalorder %s571_s28, %s572_s22  ;;  %p579_p2 = scmp.lt.s32.totalorder %s577_s4, %s572_s22 }
  0x26   : > { %p575_p9 = pnand %p574_p8, %p573_p5  ;;  %p580_p3 = por %p579_p2, %p578_p1 }
  0x28   : > { %p576_p10 = pneg %p575_p9 }
  0x2a   : > { %p581_p0 = pnand %p580_p3, %p576_p10 }
  0x2c   : > { %584 = shalt.err (!%p581_p0)
}
  0x2d   : > { %s707_s9 = smov 384   ;;  %s708_s10 = smov 24  }
  0x2e   : > { %487 = dma.hbm_to_vmem [thread:$0]  (!%p811_p7), %s163_s20, 768, %s165_s19, %s152_s27, %s707_s9, %s707_s9, %s708_s10  }
  0x2f   : > { %s174_s11 = sand.u32 1, %s704_s15   ;;  %s451_s17 = sshll.u32 %s807_s5, 6 }
  0x30   : > { %s464_s29 = sshll.u32 %s704_s15, 6  ;;  %s178_s30 = scalar_lea.vmem [#allocation5], %s451_s17 }
  0x31   : > { %s187_s2 = sshll.u32 %s178_s30, 4  ;;  %s184_s22 = scalar_lea.hbm %s940_s1, %s464_s29  ;;  %s188_s2 = int_to_ptr.vmem [resolvable:$true] %s187_s2 }
  0x32   : > { %s185_s4 = sshll.u32 %s184_s22, 4  ;;  %s175_s8 = scalar_lea.sflag [#allocation6], %s174_s11  ;;  %s186_s4 = int_to_ptr.hbm [resolvable:$true] %s185_s4 }
  0x33   : > { %s600_s0 = sshra.s32 %s186_s4, 4  ;;  %s607_s20 = scalar_lea.hbm %s940_s1, 128  ;;  %s601_s0 = int_to_ptr.hbm [resolvable:$true] %s600_s0 }
  0x34   : > { %s602_s21 = scalar_lea.hbm %s601_s0, 64  ;;  %p608_p10 = scmp.lt.s32.totalorder %s601_s0, %s940_s1 }
  0x35   : > { %p603_p0 = scmp.ne.s32.totalorder %s601_s0, %s602_s21  ;;  %p609_p1 = scmp.lt.s32.totalorder %s607_s20, %s602_s21 }
  0x37   : > { %p605_p5 = pnand %p603_p0, %p574_p8  ;;  %p610_p2 = por %p609_p1, %p608_p10 }
  0x39   : > { %p606_p9 = pneg %p605_p5 }
  0x3b   : > { %p611_p3 = pnand %p610_p2, %p606_p9 }
  0x3d   : > { %614 = shalt.err (!%p611_p3)
}
  0x3e   : > { %s709_s10 = smov 512   ;;  %s710_s11 = smov 32  }
  0x3f   : > { %490 = dma.hbm_to_vmem [thread:$0]  (!%p811_p7), %s186_s4, 1024, %s188_s2, %s175_s8, %s709_s10, %s709_s10, %s710_s11  }
  0x40   : > { %199 = sbr.rel (%p793_p13) target bundleno = 97 (0x61), region = 32  ;;  %s854_s17 = sand.u32 (!%p793_p13), 1, %s696_s13  }
  0x41   : > { %s467_s29 = smul.u32 (!%p793_p13), 48, %s854_s17  ;;  %s202_s0 = scalar_lea.sflag (!%p793_p13), [#allocation3], %s854_s17 }
  0x43   : > { %s858_s21 = scalar_lea.vmem (!%p793_p13), [#allocation2], %s467_s29 }
  0x45   : > { %675 = dma.done.wait (%p778_p6), %s202_s0, 768  }
  0x46   : > { %677 = vsyncadd (%p778_p6), %s202_s0, 4294966528  ;;  %s211_s2 = sand.u32 1, %s754_s16   ;;  %s456_s26 = sshll.u32 %s854_s17, 6 }
  0x47   : > { %s212_s6 = scalar_lea.sflag [#allocation6], %s211_s2  ;;  %s866_s30 = scalar_lea.vmem [#allocation5], %s456_s26 }
  0x48   : > { %679 = dma.done.wait (%p778_p6), %s212_s6, 1024  }
  0x49   : > { %681 = vsyncadd (%p778_p6), %s212_s6, 4294966272 }
  0x4a   : > { %683 = dma.done.wait (%p43_p4), [#allocation6], 32  }
  0x4b   : > { %685 = vsyncadd (%p43_p4), [#allocation6], 4294967264  ;;  %v252_v0 = vld [vmem:[%s858_s21] sm:$0xff]  ;;  %s468_s7 = smul.u32 80, %s854_s17  ;;  %v264_v4 = vld [vmem:[%s858_s21 + $0x10] sm:$0xff]  ;;  %s323_s19 = scalar_lea.sflag [#allocation4], %s854_s17 }
  0x4c   : > { %v254_v1 = vld [vmem:[%s866_s30] sm:$0xff]  ;;  %v266_v5 = vld [vmem:[%s866_s30 + $0x8] sm:$0xff]  ;;  %v290_v19 = vld [vmem:[%s866_s30 + $0x10] sm:$0xff]  ;;  %s469_s23 = smul.u32 80, %s754_s16  ;;  %s650_s11 = scalar_lea.hbm %s942_s3, 160 }
  0x4d   : > { %v256_v2 = vmul.f32 %v254_v1, %v252_v0  ;;  %v538_v3 = vld [vmem:[#allocation7] ss:$0 sm:$0xff]  ;;  %v268_v6 = vmul.f32 %v266_v5, %v264_v4  ;;  %v253_v7 = vld [vmem:[%s858_s21 + $0x18] sm:$0xff]  ;;  %v265_v9 = vld [vmem:[%s858_s21 + $0x28] sm:$0xff]  ;;  %v276_v10 = vmul.f32 %v266_v5, %v252_v0  ;;  %s894_s28 = scalar_lea.vmem [#allocation8], %s468_s7 }
  0x4e   : > { %v255_v8 = vld [vmem:[%s866_s30 + $0x20] sm:$0xff]  ;;  %v267_v12 = vld [vmem:[%s866_s30 + $0x28] sm:$0xff]  ;;  %v291_v24 = vld [vmem:[%s866_s30 + $0x30] sm:$0xff]  ;;  %s335_s4 = scalar_lea.hbm %s942_s3, %s469_s23  ;;  %s336_s8 = sshll.u32 %s894_s28, 4  ;;  %s337_s8 = int_to_ptr.vmem [resolvable:$true] %s336_s8 }
  0x4f   : > { %v257_v11 = vmul.f32 %v255_v8, %v253_v7  ;;  %v539_v13 = vld [vmem:[#allocation7 + $0x1] ss:$0 sm:$0xff]  ;;  %v262_v14 = vmul.f32 %v538_v3, %v256_v2  ;;  %v270_v15 = vmul.f32 %v538_v3, %v268_v6  ;;  %v269_v16 = vmul.f32 %v267_v12, %v265_v9  ;;  %v288_v18 = vld [vmem:[%s858_s21 + $0x8] sm:$0xff]  ;;  %s338_s5 = sshll.u32 %s335_s4, 4  ;;  %s339_s5 = int_to_ptr.hbm [resolvable:$true] %s338_s5 }
  0x50   : > { %v277_v17 = vmul.f32 %v267_v12, %v253_v7  ;;  %v289_v20 = vld [vmem:[%s858_s21 + $0x20] sm:$0xff]  ;;  %v282_v22 = vmul.f32 %v539_v13, %v276_v10  ;;  %v292_v23 = vmul.f32 %v290_v19, %v288_v18  ;;  %v300_v25 = vld [vmem:[%s866_s30 + $0x18] sm:$0xff]  ;;  %v310_v27 = vmul.f32 %v288_v18, %v254_v1  ;;  %s644_s20 = sshra.s32 %s339_s5, 4  ;;  %s645_s20 = int_to_ptr.hbm [resolvable:$true] %s644_s20 }
  0x51   : > { %v263_v21 = vmul.f32 %v538_v3, %v257_v11  ;;  %v301_v26 = vld [vmem:[%s866_s30 + $0x38] sm:$0xff]  ;;  %v272_v28 = vsub.f32 %v262_v14, %v270_v15  ;;  %v271_v29 = vmul.f32 %v538_v3, %v269_v16  ;;  %v293_v31 = vmul.f32 %v291_v24, %v289_v20  ;;  %s646_s27 = scalar_lea.hbm %s645_s20, 80  ;;  %p651_p7 = scmp.lt.s32.totalorder %s645_s20, %s942_s3 }
  0x52   : > { %v283_v30 = vmul.f32 %v539_v13, %v277_v17  ;;  %v284_v32 = vmul.f32 0.5, %v282_v22  ;;  %v294_v33 = vmul.f32 %v538_v3, %v292_v23  ;;  %v302_v34 = vmul.f32 %v300_v25, %v264_v4  ;;  %p647_p4 = scmp.ne.s32.totalorder %s645_s20, %s646_s27  ;;  %p652_p8 = scmp.lt.s32.totalorder %s650_s11, %s646_s27 }
  0x53   : > { %v303_v35 = vmul.f32 %v301_v26, %v265_v9  ;;  %274 = vst [vmem:[%s894_s28] sm:$0xff] %v272_v28  ;;  %v273_v36 = vsub.f32 %v263_v21, %v271_v29  ;;  %v295_v38 = vmul.f32 %v538_v3, %v293_v31  ;;  %v312_v39 = vmul.f32 %v539_v13, %v310_v27 }
  0x54   : > { %v285_v37 = vmul.f32 0.5, %v283_v30  ;;  %286 = vst [vmem:[%s894_s28 + $0x8] sm:$0xff] %v284_v32  ;;  %v296_v40 = vmul.f32 -0.75, %v294_v33  ;;  %v304_v41 = vmul.f32 %v539_v13, %v302_v34  ;;  %v316_v43 = vmul.f32 1.25, %v262_v14  ;;  %p648_p6 = pnand %p647_p4, %p785_p11  ;;  %p653_p0 = por %p652_p8, %p651_p7 }
  0x55   : > { %v305_v42 = vmul.f32 %v539_v13, %v303_v35  ;;  %275 = vst [vmem:[%s894_s28 + $0x28] sm:$0xff] %v273_v36  ;;  %v297_v44 = vmul.f32 -0.75, %v295_v38  ;;  %v314_v45 = vmul.f32 2.0, %v312_v39  ;;  %v311_v46 = vmul.f32 %v289_v20, %v255_v8 }
  0x56   : > { %287 = vst [vmem:[%s894_s28 + $0x30] sm:$0xff] %v285_v37  ;;  %v306_v47 = vmul.f32 0.25, %v304_v41  ;;  %v317_v51 = vmul.f32 1.25, %v263_v21  ;;  %p649_p13 = pneg %p648_p6 }
  0x57   : > { %v307_v48 = vmul.f32 0.25, %v305_v42  ;;  %298 = vst [vmem:[%s894_s28 + $0x10] sm:$0xff] %v296_v40  ;;  %v318_v49 = vadd.f32 %v316_v43, %v314_v45  ;;  %v313_v50 = vmul.f32 %v539_v13, %v311_v46 }
  0x58   : > { %299 = vst [vmem:[%s894_s28 + $0x38] sm:$0xff] %v297_v44  ;;  %p654_p5 = pnand %p653_p0, %p649_p13 }
  0x59   : > { %308 = vst [vmem:[%s894_s28 + $0x18] sm:$0xff] %v306_v47  ;;  %v315_v52 = vmul.f32 2.0, %v313_v50 }
  0x5a   : > { %309 = vst [vmem:[%s894_s28 + $0x40] sm:$0xff] %v307_v48 }
  0x5b   : > { %320 = vst [vmem:[%s894_s28 + $0x20] sm:$0xff] %v318_v49  ;;  %v319_v53 = vadd.f32 %v317_v51, %v315_v52 }
  0x5d   : > { %321 = vst [vmem:[%s894_s28 + $0x48] sm:$0xff] %v319_v53 }
  0x5e   : > { %657 = shalt.err (!%p654_p5)
}
  0x5f   : > { %s711_s17 = smov 640   ;;  %s712_s21 = smov 40  }
  0x60   : > { %478 = dma.vmem_to_hbm [thread:$0]  (%p785_p11), %s337_s8, 1280, %s339_s5, %s323_s19, %s711_s17, %s711_s17, %s712_s21  }
  0x61 PF: > { %s353_s2 = sand.u32 1, %s692_s12   ;;  %p954_p9 = scmp.ge.s32.totalorder %s704_s15, 2 }
  0x62   : > { %s354_s26 = scalar_lea.sflag [#allocation4], %s353_s2 }
  0x63   : > { %p492_p10 = pnand %p954_p9, %p789_p12 }
  0x65   : > { %p493_p1 = pneg %p492_p10 }
  0x67   : > { %687 = dma.done.wait (%p493_p1), %s354_s26, 1280  }
  0x68   : > { %689 = vsyncadd (%p493_p1), %s354_s26, 4294966016  ;;  %s955_s6 = sld [smem:[#allocation13_spill]]  ;;  %p19_p2 = scmp.ge.s32.totalorder %s758_s18, 4  }
  0x69   : > { %s956_s12 = smov %s696_s13  ;;  %s957_s13 = smov %s700_s14 }
  0x6a   : > { %s959_s15 = smov %s758_s18  ;;  %21 = sbr.rel (!%p19_p2) target bundleno = 10 (0xa), region = 94 }
  0x6e   : > { %s958_s14 = smov %s955_s6 }
  0x6f   :  { %360 = vsyncpa [#allocation3], 1 }
  0x70   :  { %362 = vsyncpa [#allocation3 + $0x1], 1 }
  0x71   :  { %363 = vsyncpa [#allocation6], 1 }
  0x72   :  { %365 = vsyncpa [#allocation6 + $0x1], 1 }
  0x73   :  { %366 = vsyncpa [#allocation4], 1 }
  0x74   :  { %368 = vsyncpa [#allocation4 + $0x1], 1 }

</bundles_post_ra>
